<compile_context>
chip_gen: v7x
topology: tpu7x:2x2x1
jax: 0.10.0
libtpu: 0.0.40
codegen_flags: <defaults>
</compile_context>

<pallas_src>
import jax
import jax.numpy as jnp
from jax.experimental import pallas as pl
from jax.experimental.pallas import tpu as pltpu

BOTTLENECK = 2
IN_DIM = 28 * 28            # 784
DIMS = [IN_DIM, 128, 32, BOTTLENECK, 32, 128, IN_DIM]


def _round_up(n, m):
    return ((n + m - 1) // m) * m


def _autoencoder_kernel(x_ref,
                        w1, b1, w2, b2, w34, b34, w5, b5, w6, b6,
                        o_ref):
    def lin(h, w, b):
        return jnp.dot(h, w[...], preferred_element_type=jnp.float32) + b[...]

    h = x_ref[...]
    # encoder
    h = jnp.maximum(lin(h, w1, b1), 0.0)      # 784 -> 128
    h = jnp.maximum(lin(h, w2, b2), 0.0)      # 128 -> 32
    # folded bottleneck: (32 -> 2) . (2 -> 32) collapsed into one exact
    # 32 -> 32 matmul in the wrapper (no nonlinearity between the originals),
    # followed by the decoder's first ReLU.
    h = jnp.maximum(lin(h, w34, b34), 0.0)    # 32 -> 32
    # decoder tail
    h = jnp.maximum(lin(h, w5, b5), 0.0)      # 32 -> 128
    h = lin(h, w6, b6)                        # 128 -> 784
    o_ref[...] = jax.nn.sigmoid(h)


def autoencoder_forward(x, params, *, tile_b=None):
    """x: (B, 784) float32; params: list of 6 (W_in_out, b_1_out) pairs."""
    B, D = x.shape
    assert D == IN_DIM

    (w1, b1), (w2, b2), (w3, b3), (w4, b4), (w5, b5), (w6, b6) = params

    # --- fold the rank-2 bottleneck pair into a single 32 -> 32 layer (exact).
    w34 = w3 @ w4
    b34 = b3 @ w4 + b4

    # --- batch tile: big enough to amortize per-step overhead / fill the MXU,
    # small enough that double-buffered in/out tiles + resident weights stay
    # far below every chip's scoped VMEM limit.
    if tile_b is None:
        tile_b = min(512, _round_up(B, 8))
    tile_b = max(8, _round_up(tile_b, 8))
    B_pad = _round_up(B, tile_b)
    xp = x if B_pad == B else jnp.pad(x, ((0, B_pad - B), (0, 0)))

    weights = [w1, b1, w2, b2, w34, b34, w5, b5, w6, b6]
    in_specs = [pl.BlockSpec((tile_b, IN_DIM), lambda i: (i, 0))]
    for wb in weights:
        # Full-array blocks with a constant index map: DMA'd once, VMEM-resident.
        in_specs.append(pl.BlockSpec(wb.shape, lambda i: (0, 0)))

    out = pl.pallas_call(
        _autoencoder_kernel,
        out_shape=jax.ShapeDtypeStruct((B_pad, IN_DIM), jnp.float32),
        grid_spec=pltpu.PrefetchScalarGridSpec(
            num_scalar_prefetch=0,
            grid=(B_pad // tile_b,),
            in_specs=in_specs,
            out_specs=pl.BlockSpec((tile_b, IN_DIM), lambda i: (i, 0)),
        ),
        compiler_params=pltpu.CompilerParams(
            dimension_semantics=("parallel",),
            vmem_limit_bytes=32 * 1024 * 1024,
        ),
    )(xp, *weights)

    return out if B_pad == B else out[:B]


def init_params(key):
    """Deterministic PyTorch-style init: U(-1/sqrt(fan_in), 1/sqrt(fan_in))."""
    params = []
    for idx in range(6):
        fan_in, fan_out = DIMS[idx], DIMS[idx + 1]
        key, kw, kb = jax.random.split(key, 3)
        bound = 1.0 / float(jnp.sqrt(jnp.float32(fan_in)))
        w = jax.random.uniform(kw, (fan_in, fan_out), jnp.float32, -bound, bound)
        b = jax.random.uniform(kb, (1, fan_out), jnp.float32, -bound, bound)
        params.append((w, b))
    return params


def reference_forward(x, params):
    """Unfused 6-layer chain matching the PyTorch module exactly."""
    h = x
    for i, (w, b) in enumerate(params):
        h = h @ w + b
        if i in (0, 1, 3, 4):   # ReLU after enc L1/L2 and dec L1/L2
            h = jnp.maximum(h, 0.0)
    return jax.nn.sigmoid(h)


if __name__ == "__main__":
    key = jax.random.PRNGKey(0)
    kx, kp = jax.random.split(key)
    params = init_params(kp)

    fwd = jax.jit(autoencoder_forward)

    # Deterministic checks: batch that is a multiple of 8 (no padding path),
    # one that isn't (exercises the row-padding path), and a larger one.
    for B in (8, 50, 64):
        kx, kb = jax.random.split(kx)
        x = jax.random.uniform(kb, (B, IN_DIM), jnp.float32)  # "images" in [0,1)

        out = jax.block_until_ready(fwd(x, params))
        assert out.shape == (B, IN_DIM) and out.dtype == jnp.float32

        ref = reference_forward(x, params)
        err = float(jnp.max(jnp.abs(out - ref)))
        assert err < 1e-5, f"B={B}: max abs diff = {err}"

    print("KERNEL_OK")
</pallas_src>

<mosaic_0001>
module attributes {stable_mosaic.version = 11 : i64} {
  func.func @_autoencoder_kernel(%arg0: i32, %arg1: memref<8x784xf32, #tpu.memory_space<vmem>>, %arg2: memref<784x128xf32, #tpu.memory_space<vmem>>, %arg3: memref<1x128xf32, #tpu.memory_space<vmem>>, %arg4: memref<128x32xf32, #tpu.memory_space<vmem>>, %arg5: memref<1x32xf32, #tpu.memory_space<vmem>>, %arg6: memref<32x32xf32, #tpu.memory_space<vmem>>, %arg7: memref<1x32xf32, #tpu.memory_space<vmem>>, %arg8: memref<32x128xf32, #tpu.memory_space<vmem>>, %arg9: memref<1x128xf32, #tpu.memory_space<vmem>>, %arg10: memref<128x784xf32, #tpu.memory_space<vmem>>, %arg11: memref<1x784xf32, #tpu.memory_space<vmem>>, %arg12: memref<8x784xf32, #tpu.memory_space<vmem>>) attributes {dimension_semantics = [#tpu.dimension_semantics<parallel>], iteration_bounds = array<i64: 1>, scalar_prefetch = 0 : i64, scratch_operands = 0 : i64, tpu.core_type = #tpu.core_type<tc>, window_params = [{transform_indices = @transform_0, window_bounds = array<i64: 8, 784>}, {pipeline_mode = #tpu.pipeline_mode<synchronous>, transform_indices = @transform_1, window_bounds = array<i64: 784, 128>}, {pipeline_mode = #tpu.pipeline_mode<synchronous>, transform_indices = @transform_2, window_bounds = array<i64: 1, 128>}, {pipeline_mode = #tpu.pipeline_mode<synchronous>, transform_indices = @transform_3, window_bounds = array<i64: 128, 32>}, {pipeline_mode = #tpu.pipeline_mode<synchronous>, transform_indices = @transform_4, window_bounds = array<i64: 1, 32>}, {pipeline_mode = #tpu.pipeline_mode<synchronous>, transform_indices = @transform_5, window_bounds = array<i64: 32, 32>}, {pipeline_mode = #tpu.pipeline_mode<synchronous>, transform_indices = @transform_6, window_bounds = array<i64: 1, 32>}, {pipeline_mode = #tpu.pipeline_mode<synchronous>, transform_indices = @transform_7, window_bounds = array<i64: 32, 128>}, {pipeline_mode = #tpu.pipeline_mode<synchronous>, transform_indices = @transform_8, window_bounds = array<i64: 1, 128>}, {pipeline_mode = #tpu.pipeline_mode<synchronous>, transform_indices = @transform_9, window_bounds = array<i64: 128, 784>}, {pipeline_mode = #tpu.pipeline_mode<synchronous>, transform_indices = @transform_10, window_bounds = array<i64: 1, 784>}, {transform_indices = @transform_11, window_bounds = array<i64: 8, 784>}]} {
    %c0 = arith.constant 0 : index
    %c0_0 = arith.constant 0 : index
    %0 = vector.load %arg1[%c0, %c0_0] : memref<8x784xf32, #tpu.memory_space<vmem>>, vector<8x784xf32>
    %c0_1 = arith.constant 0 : index
    %c0_2 = arith.constant 0 : index
    %1 = vector.load %arg2[%c0_1, %c0_2] : memref<784x128xf32, #tpu.memory_space<vmem>>, vector<784x128xf32>
    %cst = arith.constant dense<0.000000e+00> : vector<8x128xf32>
    %2 = tpu.matmul %0, %1, %cst {dimension_numbers = #tpu.dot_dimension_numbers<[1], [0], [0], [1], [0, 0, 1, 1], [], []>} : vector<8x784xf32>, vector<784x128xf32>, vector<8x128xf32> -> vector<8x128xf32>
    %c0_3 = arith.constant 0 : index
    %c0_4 = arith.constant 0 : index
    %3 = vector.load %arg3[%c0_3, %c0_4] : memref<1x128xf32, #tpu.memory_space<vmem>>, vector<1x128xf32>
    %4 = vector.broadcast %3 : vector<1x128xf32> to vector<8x128xf32>
    %5 = arith.addf %2, %4 : vector<8x128xf32>
    %cst_5 = arith.constant 0.000000e+00 : f32
    %6 = vector.broadcast %cst_5 : f32 to vector<8x128xf32>
    %7 = arith.maximumf %5, %6 : vector<8x128xf32>
    %c0_6 = arith.constant 0 : index
    %c0_7 = arith.constant 0 : index
    %8 = vector.load %arg4[%c0_6, %c0_7] : memref<128x32xf32, #tpu.memory_space<vmem>>, vector<128x32xf32>
    %cst_8 = arith.constant dense<0.000000e+00> : vector<8x32xf32>
    %9 = tpu.matmul %7, %8, %cst_8 {dimension_numbers = #tpu.dot_dimension_numbers<[1], [0], [0], [1], [0, 0, 1, 1], [], []>} : vector<8x128xf32>, vector<128x32xf32>, vector<8x32xf32> -> vector<8x32xf32>
    %c0_9 = arith.constant 0 : index
    %c0_10 = arith.constant 0 : index
    %10 = vector.load %arg5[%c0_9, %c0_10] : memref<1x32xf32, #tpu.memory_space<vmem>>, vector<1x32xf32>
    %11 = vector.broadcast %10 : vector<1x32xf32> to vector<8x32xf32>
    %12 = arith.addf %9, %11 : vector<8x32xf32>
    %cst_11 = arith.constant 0.000000e+00 : f32
    %13 = vector.broadcast %cst_11 : f32 to vector<8x32xf32>
    %14 = arith.maximumf %12, %13 : vector<8x32xf32>
    %c0_12 = arith.constant 0 : index
    %c0_13 = arith.constant 0 : index
    %15 = vector.load %arg6[%c0_12, %c0_13] : memref<32x32xf32, #tpu.memory_space<vmem>>, vector<32x32xf32>
    %cst_14 = arith.constant dense<0.000000e+00> : vector<8x32xf32>
    %16 = tpu.matmul %14, %15, %cst_14 {dimension_numbers = #tpu.dot_dimension_numbers<[1], [0], [0], [1], [0, 0, 1, 1], [], []>} : vector<8x32xf32>, vector<32x32xf32>, vector<8x32xf32> -> vector<8x32xf32>
    %c0_15 = arith.constant 0 : index
    %c0_16 = arith.constant 0 : index
    %17 = vector.load %arg7[%c0_15, %c0_16] : memref<1x32xf32, #tpu.memory_space<vmem>>, vector<1x32xf32>
    %18 = vector.broadcast %17 : vector<1x32xf32> to vector<8x32xf32>
    %19 = arith.addf %16, %18 : vector<8x32xf32>
    %cst_17 = arith.constant 0.000000e+00 : f32
    %20 = vector.broadcast %cst_17 : f32 to vector<8x32xf32>
    %21 = arith.maximumf %19, %20 : vector<8x32xf32>
    %c0_18 = arith.constant 0 : index
    %c0_19 = arith.constant 0 : index
    %22 = vector.load %arg8[%c0_18, %c0_19] : memref<32x128xf32, #tpu.memory_space<vmem>>, vector<32x128xf32>
    %cst_20 = arith.constant dense<0.000000e+00> : vector<8x128xf32>
    %23 = tpu.matmul %21, %22, %cst_20 {dimension_numbers = #tpu.dot_dimension_numbers<[1], [0], [0], [1], [0, 0, 1, 1], [], []>} : vector<8x32xf32>, vector<32x128xf32>, vector<8x128xf32> -> vector<8x128xf32>
    %c0_21 = arith.constant 0 : index
    %c0_22 = arith.constant 0 : index
    %24 = vector.load %arg9[%c0_21, %c0_22] : memref<1x128xf32, #tpu.memory_space<vmem>>, vector<1x128xf32>
    %25 = vector.broadcast %24 : vector<1x128xf32> to vector<8x128xf32>
    %26 = arith.addf %23, %25 : vector<8x128xf32>
    %cst_23 = arith.constant 0.000000e+00 : f32
    %27 = vector.broadcast %cst_23 : f32 to vector<8x128xf32>
    %28 = arith.maximumf %26, %27 : vector<8x128xf32>
    %c0_24 = arith.constant 0 : index
    %c0_25 = arith.constant 0 : index
    %29 = vector.load %arg10[%c0_24, %c0_25] : memref<128x784xf32, #tpu.memory_space<vmem>>, vector<128x784xf32>
    %cst_26 = arith.constant dense<0.000000e+00> : vector<8x784xf32>
    %30 = tpu.matmul %28, %29, %cst_26 {dimension_numbers = #tpu.dot_dimension_numbers<[1], [0], [0], [1], [0, 0, 1, 1], [], []>} : vector<8x128xf32>, vector<128x784xf32>, vector<8x784xf32> -> vector<8x784xf32>
    %c0_27 = arith.constant 0 : index
    %c0_28 = arith.constant 0 : index
    %31 = vector.load %arg11[%c0_27, %c0_28] : memref<1x784xf32, #tpu.memory_space<vmem>>, vector<1x784xf32>
    %32 = vector.broadcast %31 : vector<1x784xf32> to vector<8x784xf32>
    %33 = arith.addf %30, %32 : vector<8x784xf32>
    %34 = arith.negf %33 : vector<8x784xf32>
    %35 = math.exp %34 : vector<8x784xf32>
    %cst_29 = arith.constant 1.000000e+00 : f32
    %36 = vector.broadcast %cst_29 : f32 to vector<8x784xf32>
    %37 = arith.addf %36, %35 : vector<8x784xf32>
    %38 = arith.divf %36, %37 : vector<8x784xf32>
    %c0_30 = arith.constant 0 : index
    %c0_31 = arith.constant 0 : index
    %39 = vector.load %arg12[%c0_30, %c0_31] : memref<8x784xf32, #tpu.memory_space<vmem>>, vector<8x784xf32>
    tpu.vector_store %arg12[%c0_30, %c0_31], %38 {strides = array<i32>} : memref<8x784xf32, #tpu.memory_space<vmem>>, vector<8x784xf32>,
    return
  }
  func.func @transform_0(%arg0: i32) -> (i32, i32) {
    %c0_i32 = arith.constant 0 : i32
    %c0_i32_0 = arith.constant 0 : i32
    return %arg0, %c0_i32 : i32, i32
  }
  func.func @transform_1(%arg0: i32) -> (i32, i32) {
    %c0_i32 = arith.constant 0 : i32
    %c0_i32_0 = arith.constant 0 : i32
    %c0_i32_1 = arith.constant 0 : i32
    return %c0_i32, %c0_i32_0 : i32, i32
  }
  func.func @transform_2(%arg0: i32) -> (i32, i32) {
    %c0_i32 = arith.constant 0 : i32
    %c0_i32_0 = arith.constant 0 : i32
    %c0_i32_1 = arith.constant 0 : i32
    return %c0_i32, %c0_i32_0 : i32, i32
  }
  func.func @transform_3(%arg0: i32) -> (i32, i32) {
    %c0_i32 = arith.constant 0 : i32
    %c0_i32_0 = arith.constant 0 : i32
    %c0_i32_1 = arith.constant 0 : i32
    return %c0_i32, %c0_i32_0 : i32, i32
  }
  func.func @transform_4(%arg0: i32) -> (i32, i32) {
    %c0_i32 = arith.constant 0 : i32
    %c0_i32_0 = arith.constant 0 : i32
    %c0_i32_1 = arith.constant 0 : i32
    return %c0_i32, %c0_i32_0 : i32, i32
  }
  func.func @transform_5(%arg0: i32) -> (i32, i32) {
    %c0_i32 = arith.constant 0 : i32
    %c0_i32_0 = arith.constant 0 : i32
    %c0_i32_1 = arith.constant 0 : i32
    return %c0_i32, %c0_i32_0 : i32, i32
  }
  func.func @transform_6(%arg0: i32) -> (i32, i32) {
    %c0_i32 = arith.constant 0 : i32
    %c0_i32_0 = arith.constant 0 : i32
    %c0_i32_1 = arith.constant 0 : i32
    return %c0_i32, %c0_i32_0 : i32, i32
  }
  func.func @transform_7(%arg0: i32) -> (i32, i32) {
    %c0_i32 = arith.constant 0 : i32
    %c0_i32_0 = arith.constant 0 : i32
    %c0_i32_1 = arith.constant 0 : i32
    return %c0_i32, %c0_i32_0 : i32, i32
  }
  func.func @transform_8(%arg0: i32) -> (i32, i32) {
    %c0_i32 = arith.constant 0 : i32
    %c0_i32_0 = arith.constant 0 : i32
    %c0_i32_1 = arith.constant 0 : i32
    return %c0_i32, %c0_i32_0 : i32, i32
  }
  func.func @transform_9(%arg0: i32) -> (i32, i32) {
    %c0_i32 = arith.constant 0 : i32
    %c0_i32_0 = arith.constant 0 : i32
    %c0_i32_1 = arith.constant 0 : i32
    return %c0_i32, %c0_i32_0 : i32, i32
  }
  func.func @transform_10(%arg0: i32) -> (i32, i32) {
    %c0_i32 = arith.constant 0 : i32
    %c0_i32_0 = arith.constant 0 : i32
    %c0_i32_1 = arith.constant 0 : i32
    return %c0_i32, %c0_i32_0 : i32, i32
  }
  func.func @transform_11(%arg0: i32) -> (i32, i32) {
    %c0_i32 = arith.constant 0 : i32
    %c0_i32_0 = arith.constant 0 : i32
    return %arg0, %c0_i32 : i32, i32
  }
}

</mosaic_0001>

<bundles_post_ra>
// kernel: autoencoder_forward.1
= control target key start
LH: loop header
LB: loop body
LE: loop exit
PB: predicated region body
PF: predicated region fallthrough
CT: control target
= control target key end

     0   :  { %s2630_s0 = inlined_call_operand.vmem [shape: f32[8,784], index: 0, kind: input, shape index: {}]   ;;  %s2631_s1 = inlined_call_operand.vmem [shape: f32[784,128], index: 1, kind: input, shape index: {}]   ;;  %s2632_s2 = inlined_call_operand.vmem [shape: f32[1,128], index: 2, kind: input, shape index: {}]   ;;  %s2633_s3 = inlined_call_operand.vmem [shape: f32[128,32], index: 3, kind: input, shape index: {}]   ;;  %s2634_s4 = inlined_call_operand.vmem [shape: f32[1,32], index: 4, kind: input, shape index: {}]   ;;  %s2635_s5 = inlined_call_operand.vmem [shape: f32[32,32], index: 5, kind: input, shape index: {}]   ;;  %s2636_s6 = inlined_call_operand.vmem [shape: f32[1,32], index: 6, kind: input, shape index: {}]   ;;  %s2637_s7 = inlined_call_operand.vmem [shape: f32[32,128], index: 7, kind: input, shape index: {}]   ;;  %s2638_s8 = inlined_call_operand.vmem [shape: f32[1,128], index: 8, kind: input, shape index: {}]   ;;  %s2639_s9 = inlined_call_operand.vmem [shape: f32[128,784], index: 9, kind: input, shape index: {}]   ;;  %s2640_s10 = inlined_call_operand.vmem [shape: f32[1,784], index: 10, kind: input, shape index: {}]   ;;  %s2641_s11 = inlined_call_operand.hbm [shape: f32[8,784], index: 11, kind: output, shape index: {}]  }
   0x1   :  { %v62_v0 = vld [vmem:[%s2631_s1 + $0x80] sm:$0xff]  ;;  %v63_v1 = vld [vmem:[%s2631_s1 + $0x88] sm:$0xff]  ;;  %v64_v11 = vld [vmem:[%s2631_s1 + $0x90] sm:$0xff] }
   0x2   :  { %v46_v2 = vld [vmem:[%s2631_s1] sm:$0xff]  ;;  %v1461_v3 = vpack.c.bf16 %v63_v1, %v62_v0  ;;  %v47_v4 = vld [vmem:[%s2631_s1 + $0x8] sm:$0xff]  ;;  %v65_v13 = vld [vmem:[%s2631_s1 + $0x98] sm:$0xff] }
   0x3   :  { %v94_v5 = vld [vmem:[%s2631_s1 + $0x180] sm:$0xff]  ;;  %v95_v6 = vld [vmem:[%s2631_s1 + $0x188] sm:$0xff]  ;;  %v1463_v7 = vpack.c.bf16 %v47_v4, %v46_v2  ;;  %v48_v14 = vld [vmem:[%s2631_s1 + $0x10] sm:$0xff]  ;;  %v1465_v16 = vpack.c.bf16 %v65_v13, %v64_v11 }
   0x4   :  { %v1493_v8 = vpack.c.bf16 %v95_v6, %v94_v5  ;;  %v78_v9 = vld [vmem:[%s2631_s1 + $0x100] sm:$0xff]  ;;  %v79_v10 = vld [vmem:[%s2631_s1 + $0x108] sm:$0xff]  ;;  %1462 = vmatprep.subr.bf16.mxu0 %v1461_v3  ;;  %v49_v15 = vld [vmem:[%s2631_s1 + $0x18] sm:$0xff] }
   0x5   :  { %v1495_v12 = vpack.c.bf16 %v79_v10, %v78_v9  ;;  %1464 = vmatpush3.bf16.msra.mxu0 %v1463_v7  ;;  %v1467_v17 = vpack.c.bf16 %v49_v15, %v48_v14  ;;  %v96_v18 = vld [vmem:[%s2631_s1 + $0x190] sm:$0xff]  ;;  %v97_v19 = vld [vmem:[%s2631_s1 + $0x198] sm:$0xff]  ;;  %v66_v23 = vld [vmem:[%s2631_s1 + $0xa0] sm:$0xff] }
   0x6   :  { %1494 = vmatprep.subr.bf16.mxu1 %v1493_v8  ;;  %v80_v20 = vld [vmem:[%s2631_s1 + $0x110] sm:$0xff]  ;;  %v1497_v21 = vpack.c.bf16 %v97_v19, %v96_v18  ;;  %v81_v22 = vld [vmem:[%s2631_s1 + $0x118] sm:$0xff]  ;;  %v67_v24 = vld [vmem:[%s2631_s1 + $0xa8] sm:$0xff]  ;;  %1466 = vmatprep.subr.bf16.mxu0 %v1465_v16 }
   0x7   :  { %1496 = vmatpush3.bf16.msra.mxu1 %v1495_v12  ;;  %v1499_v25 = vpack.c.bf16 %v81_v22, %v80_v20  ;;  %v1469_v26 = vpack.c.bf16 %v67_v24, %v66_v23  ;;  %v50_v27 = vld [vmem:[%s2631_s1 + $0x20] sm:$0xff]  ;;  %v51_v28 = vld [vmem:[%s2631_s1 + $0x28] sm:$0xff]  ;;  %v68_v35 = vld [vmem:[%s2631_s1 + $0xb0] sm:$0xff] }
   0x8   :  { %v98_v29 = vld [vmem:[%s2631_s1 + $0x1a0] sm:$0xff]  ;;  %1498 = vmatprep.subr.bf16.mxu1 %v1497_v21  ;;  %v99_v30 = vld [vmem:[%s2631_s1 + $0x1a8] sm:$0xff]  ;;  %v1471_v33 = vpack.c.bf16 %v51_v28, %v50_v27  ;;  %v69_v36 = vld [vmem:[%s2631_s1 + $0xb8] sm:$0xff] }
   0x9   :  { %v82_v31 = vld [vmem:[%s2631_s1 + $0x120] sm:$0xff]  ;;  %v83_v32 = vld [vmem:[%s2631_s1 + $0x128] sm:$0xff]  ;;  %1468 = vmatpush3.bf16.msra.mxu0 %v1467_v17  ;;  %v1501_v34 = vpack.c.bf16 %v99_v30, %v98_v29  ;;  %v52_v37 = vld [vmem:[%s2631_s1 + $0x30] sm:$0xff]  ;;  %v1473_v39 = vpack.c.bf16 %v69_v36, %v68_v35 }
   0xa   :  { %1470 = vmatprep.subr.bf16.mxu0 %v1469_v26  ;;  %v1503_v38 = vpack.c.bf16 %v83_v32, %v82_v31  ;;  %v53_v40 = vld [vmem:[%s2631_s1 + $0x38] sm:$0xff]  ;;  %v100_v41 = vld [vmem:[%s2631_s1 + $0x1b0] sm:$0xff]  ;;  %v70_v46 = vld [vmem:[%s2631_s1 + $0xc0] sm:$0xff] }
   0xb   :  { %1500 = vmatpush3.bf16.msra.mxu1 %v1499_v25  ;;  %v101_v42 = vld [vmem:[%s2631_s1 + $0x1b8] sm:$0xff]  ;;  %v84_v44 = vld [vmem:[%s2631_s1 + $0x130] sm:$0xff]  ;;  %v71_v47 = vld [vmem:[%s2631_s1 + $0xc8] sm:$0xff]  ;;  %v1475_v48 = vpack.c.bf16 %v53_v40, %v52_v37 }
   0xc   :  { %1502 = vmatprep.subr.bf16.mxu1 %v1501_v34  ;;  %v1505_v43 = vpack.c.bf16 %v101_v42, %v100_v41  ;;  %v85_v45 = vld [vmem:[%s2631_s1 + $0x138] sm:$0xff]  ;;  %v102_v49 = vld [vmem:[%s2631_s1 + $0x1c0] sm:$0xff]  ;;  %v103_v50 = vld [vmem:[%s2631_s1 + $0x1c8] sm:$0xff]  ;;  %v1477_v52 = vpack.c.bf16 %v71_v47, %v70_v46 }
   0xd   :  { %1472 = vmatpush3.bf16.msra.mxu0 %v1471_v33  ;;  %v1507_v51 = vpack.c.bf16 %v85_v45, %v84_v44  ;;  %v54_v53 = vld [vmem:[%s2631_s1 + $0x40] sm:$0xff]  ;;  %v55_v54 = vld [vmem:[%s2631_s1 + $0x48] sm:$0xff]  ;;  %v1509_v56 = vpack.c.bf16 %v103_v50, %v102_v49  ;;  %v72_v58 = vld [vmem:[%s2631_s1 + $0xd0] sm:$0xff]  ;;  %v1772_v50 = vmov 0.0|0.0  }
   0xe   :  { %1474 = vmatprep.subr.bf16.mxu0 %v1473_v39  ;;  %v86_v55 = vld [vmem:[%s2631_s1 + $0x140] sm:$0xff]  ;;  %v87_v57 = vld [vmem:[%s2631_s1 + $0x148] sm:$0xff]  ;;  %v73_v59 = vld [vmem:[%s2631_s1 + $0xd8] sm:$0xff]  ;;  %v1479_v62 = vpack.c.bf16 %v55_v54, %v54_v53 }
   0xf   :  { %1504 = vmatpush3.bf16.msra.mxu1 %v1503_v38  ;;  %v104_v60 = vld [vmem:[%s2631_s1 + $0x1d0] sm:$0xff]  ;;  %v105_v61 = vld [vmem:[%s2631_s1 + $0x1d8] sm:$0xff]  ;;  %v1511_v63 = vpack.c.bf16 %v87_v57, %v86_v55  ;;  %v1481_v0 = vpack.c.bf16 %v73_v59, %v72_v58  ;;  %v74_v6 = vld [vmem:[%s2631_s1 + $0xe0] sm:$0xff] }
  0x10   :  { %1506 = vmatprep.subr.bf16.mxu1 %v1505_v43  ;;  %v56_v1 = vld [vmem:[%s2631_s1 + $0x50] sm:$0xff]  ;;  %v57_v2 = vld [vmem:[%s2631_s1 + $0x58] sm:$0xff]  ;;  %v1513_v4 = vpack.c.bf16 %v105_v61, %v104_v60  ;;  %v75_v7 = vld [vmem:[%s2631_s1 + $0xe8] sm:$0xff] }
  0x11   :  { %1476 = vmatpush3.bf16.msra.mxu0 %v1475_v48  ;;  %v88_v3 = vld [vmem:[%s2631_s1 + $0x150] sm:$0xff]  ;;  %v89_v5 = vld [vmem:[%s2631_s1 + $0x158] sm:$0xff]  ;;  %v106_v8 = vld [vmem:[%s2631_s1 + $0x1e0] sm:$0xff]  ;;  %v1483_v10 = vpack.c.bf16 %v57_v2, %v56_v1  ;;  %v1485_v14 = vpack.c.bf16 %v75_v7, %v74_v6 }
  0x12   :  { %1478 = vmatprep.subr.bf16.mxu0 %v1477_v52  ;;  %v107_v9 = vld [vmem:[%s2631_s1 + $0x1e8] sm:$0xff]  ;;  %v58_v11 = vld [vmem:[%s2631_s1 + $0x60] sm:$0xff]  ;;  %v1515_v13 = vpack.c.bf16 %v89_v5, %v88_v3  ;;  %v76_v19 = vld [vmem:[%s2631_s1 + $0xf0] sm:$0xff] }
  0x13   :  { %1508 = vmatpush3.bf16.msra.mxu1 %v1507_v51  ;;  %v40_v12 = vld [vmem:[%s2630_s0 + $0x8] sm:$0xff]  ;;  %v90_v16 = vld [vmem:[%s2631_s1 + $0x160] sm:$0xff]  ;;  %v1517_v18 = vpack.c.bf16 %v107_v9, %v106_v8  ;;  %v77_v20 = vld [vmem:[%s2631_s1 + $0xf8] sm:$0xff] }
  0x14   :  { %1510 = vmatprep.subr.bf16.mxu1 %v1509_v56  ;;  %v59_v15 = vld [vmem:[%s2631_s1 + $0x68] sm:$0xff]  ;;  %219 = vmatprep.mubr.f32.mxu0 %v40_v12  ;;  %v42_v21 = vld [vmem:[%s2630_s0 + $0x18] sm:$0xff]  ;;  %v108_v22 = vld [vmem:[%s2631_s1 + $0x1f0] sm:$0xff]  ;;  %v1489_v26 = vpack.c.bf16 %v77_v20, %v76_v19 }
  0x15   :  { %1480 = vmatpush3.bf16.msra.mxu0 %v1479_v62  ;;  %v91_v17 = vld [vmem:[%s2631_s1 + $0x168] sm:$0xff]  ;;  %v109_v23 = vld [vmem:[%s2631_s1 + $0x1f8] sm:$0xff]  ;;  %289 = vmatprep.mubr.f32.mxu1 %v42_v21  ;;  %v1487_v24 = vpack.c.bf16 %v59_v15, %v58_v11  ;;  %v60_v27 = vld [vmem:[%s2631_s1 + $0x70] sm:$0xff] }
  0x16   :  { %1482 = vmatprep.subr.bf16.mxu0 %v1481_v0  ;;  %v1519_v25 = vpack.c.bf16 %v91_v17, %v90_v16  ;;  %v61_v28 = vld [vmem:[%s2631_s1 + $0x78] sm:$0xff]  ;;  %v92_v29 = vld [vmem:[%s2631_s1 + $0x170] sm:$0xff]  ;;  %v1521_v30 = vpack.c.bf16 %v109_v23, %v108_v22  ;;  %v126_v32 = vld [vmem:[%s2631_s1 + $0x280] sm:$0xff] }
  0x17   :  { %1512 = vmatpush3.bf16.msra.mxu1 %v1511_v63  ;;  %v93_v31 = vld [vmem:[%s2631_s1 + $0x178] sm:$0xff]  ;;  %v127_v33 = vld [vmem:[%s2631_s1 + $0x288] sm:$0xff]  ;;  %v1491_v34 = vpack.c.bf16 %v61_v28, %v60_v27  ;;  %v110_v37 = vld [vmem:[%s2631_s1 + $0x200] sm:$0xff] }
  0x18   :  { %1514 = vmatprep.subr.bf16.mxu1 %v1513_v4  ;;  %v1523_v35 = vpack.c.bf16 %v93_v31, %v92_v29  ;;  %v1525_v36 = vpack.c.bf16 %v127_v33, %v126_v32  ;;  %v111_v38 = vld [vmem:[%s2631_s1 + $0x208] sm:$0xff]  ;;  %v128_v39 = vld [vmem:[%s2631_s1 + $0x290] sm:$0xff]  ;;  %v129_v40 = vld [vmem:[%s2631_s1 + $0x298] sm:$0xff] }
  0x19   :  { %1484 = vmatpush3.bf16.msra.mxu0 %v1483_v10  ;;  %v39_v41 = vld [vmem:[%s2630_s0] sm:$0xff]  ;;  %v1527_v42 = vpack.c.bf16 %v111_v38, %v110_v37  ;;  %v41_v43 = vld [vmem:[%s2630_s0 + $0x10] sm:$0xff]  ;;  %v1529_v45 = vpack.c.bf16 %v129_v40, %v128_v39  ;;  %v113_v46 = vld [vmem:[%s2631_s1 + $0x218] sm:$0xff] }
  0x1a   :  { %1486 = vmatprep.subr.bf16.mxu0 %v1485_v14  ;;  %v112_v44 = vld [vmem:[%s2631_s1 + $0x210] sm:$0xff]  ;;  %v130_v47 = vld [vmem:[%s2631_s1 + $0x2a0] sm:$0xff]  ;;  %v131_v48 = vld [vmem:[%s2631_s1 + $0x2a8] sm:$0xff] }
  0x1b   :  { %1516 = vmatpush3.bf16.msra.mxu1 %v1515_v13  ;;  %v44_v49 = vld [vmem:[%s2630_s0 + $0x28] sm:$0xff]  ;;  %v142_v51 = vld [vmem:[%s2631_s1 + $0x300] sm:$0xff] }
  0x1c   :  { %1518 = vmatprep.subr.bf16.mxu1 %v1517_v18  ;;  %v143_v52 = vld [vmem:[%s2631_s1 + $0x308] sm:$0xff] }
  0x1d   :  { %1488 = vmatpush3.bf16.msra.mxu0 %v1487_v24  ;;  %v1558_v53 = vpack.c.bf16 %v143_v52, %v142_v51 }
  0x1e   :  { %1490 = vmatprep.subr.bf16.mxu0 %v1489_v26 }
  0x1f   :  { %1520 = vmatpush3.bf16.msra.mxu1 %v1519_v25 }
  0x20   :  { %1522 = vmatprep.subr.bf16.mxu1 %v1521_v30 }
  0x21   :  { %1492 = vmatpush3.bf16.msra.mxu0 %v1491_v34 }
  0x22   :  { %1526 = vmatprep.subr.bf16.mxu0 %v1525_v36 }
  0x23   :  { %1524 = vmatpush3.bf16.msra.mxu1 %v1523_v35 }
  0x24   :  { %1557 = vmatprep.subr.bf16.mxu1 %v1772_v50  ;;  %220 = vmatmul.mubr.f32.vlgmr.msra.gmra.mrb[0].mxu0 %v39_v41 }
  0x25   :  { %16 = vsyncpa [#allocation3], 0  ;;  %1528 = vmatpush3.bf16.msra.mxu0 %v1527_v42  ;;  %v1531_v54 = vpack.c.bf16 %v113_v46, %v112_v44  ;;  %v1533_v55 = vpack.c.bf16 %v131_v48, %v130_v47  ;;  %v114_v56 = vld [vmem:[%s2631_s1 + $0x220] sm:$0xff]  ;;  %v115_v57 = vld [vmem:[%s2631_s1 + $0x228] sm:$0xff]  ;;  %359 = vmatprep.mubr.f32.mxu0 %v44_v49  ;;  %vm1773_vm0 = vmmov 0   ;;  %v1774_v60 = vmov 0.0  }
  0x26   :  { %290 = vmatmul.mubr.f32.vlgmr.msra.gmra.mrb[0].mxu1 %v41_v43  ;;  %1530 = vmatprep.subr.bf16.mxu0 %v1529_v45  ;;  %v132_v58 = vld [vmem:[%s2631_s1 + $0x2b0] sm:$0xff]  ;;  %v133_v59 = vld [vmem:[%s2631_s1 + $0x2b8] sm:$0xff]  ;;  %vm151_vm1 = vcmask 130048   ;;  %v1535_v62 = vpack.c.bf16 %v115_v57, %v114_v56  ;;  %v134_v2 = vld [vmem:[%s2631_s1 + $0x2c0] sm:$0xff]  ;;  %vm541_vm2 = vcmask 261120  }
  0x27   :  { %1559 = vmatpush3.bf16.msra.mxu1 %v1558_v53  ;;  %1366 = vmatprep.mubr.msk.f32.mxu1 %vm1773_vm0, %v1774_v60  ;;  %v45_v61 = vld [vmem:[%s2630_s0 + $0x30] sm:$0xff]  ;;  %v1537_v63 = vpack.c.bf16 %v133_v59, %v132_v58  ;;  %v117_v1 = vld [vmem:[%s2631_s1 + $0x238] sm:$0xff]  ;;  %v135_v3 = vld [vmem:[%s2631_s1 + $0x2c8] sm:$0xff] }
  0x28   :  { %1560 = vmatprep.subr.bf16.mxu1 %v1772_v50  ;;  %v116_v0 = vld [vmem:[%s2631_s1 + $0x230] sm:$0xff]  ;;  %v1541_v5 = vpack.c.bf16 %v135_v3, %v134_v2  ;;  %v118_v6 = vld [vmem:[%s2631_s1 + $0x240] sm:$0xff]  ;;  %v119_v7 = vld [vmem:[%s2631_s1 + $0x248] sm:$0xff] }
  0x29   :  { %1532 = vmatpush3.bf16.msra.mxu0 %v1531_v54  ;;  %v1539_v4 = vpack.c.bf16 %v117_v1, %v116_v0  ;;  %v136_v8 = vld [vmem:[%s2631_s1 + $0x2d0] sm:$0xff]  ;;  %v137_v9 = vld [vmem:[%s2631_s1 + $0x2d8] sm:$0xff]  ;;  %v1543_v10 = vpack.c.bf16 %v119_v7, %v118_v6  ;;  %v138_v14 = vld [vmem:[%s2631_s1 + $0x2e0] sm:$0xff] }
  0x2a   :  { %1534 = vmatprep.subr.bf16.mxu0 %v1533_v55  ;;  %1367 = vmatmul.mubr.msk.f32.vlgmr.msra.gmra.mrb[2].mxu1 %vm151_vm1, %v45_v61  ;;  %v1545_v11 = vpack.c.bf16 %v137_v9, %v136_v8  ;;  %v120_v12 = vld [vmem:[%s2631_s1 + $0x250] sm:$0xff]  ;;  %v121_v13 = vld [vmem:[%s2631_s1 + $0x258] sm:$0xff]  ;;  %v139_v15 = vld [vmem:[%s2631_s1 + $0x2e8] sm:$0xff] }
  0x2b   :  { %1401 = vmatprep.mubr.msk.f32.mxu1 %vm1773_vm0, %v1774_v60  ;;  %v1547_v16 = vpack.c.bf16 %v121_v13, %v120_v12  ;;  %v1549_v17 = vpack.c.bf16 %v139_v15, %v138_v14  ;;  %v122_v18 = vld [vmem:[%s2631_s1 + $0x260] sm:$0xff]  ;;  %v123_v19 = vld [vmem:[%s2631_s1 + $0x268] sm:$0xff]  ;;  %v140_v20 = vld [vmem:[%s2631_s1 + $0x2f0] sm:$0xff] }
  0x2c   :  { %v141_v21 = vld [vmem:[%s2631_s1 + $0x2f8] sm:$0xff]  ;;  %v1551_v22 = vpack.c.bf16 %v123_v19, %v122_v18  ;;  %v124_v24 = vld [vmem:[%s2631_s1 + $0x270] sm:$0xff]  ;;  %v43_v27 = vld [vmem:[%s2630_s0 + $0x20] sm:$0xff] }
  0x2d   :  { %1536 = vmatpush3.bf16.msra.mxu0 %v1535_v62  ;;  %v1553_v23 = vpack.c.bf16 %v141_v21, %v140_v20  ;;  %v125_v25 = vld [vmem:[%s2631_s1 + $0x278] sm:$0xff]  ;;  %v436_v28 = vld [vmem:[%s2633_s3] sm:$0xff]  ;;  %v437_v29 = vld [vmem:[%s2633_s3 + $0x8] sm:$0xff] }
  0x2e   :  { %1538 = vmatprep.subr.bf16.mxu0 %v1537_v63  ;;  %v1555_v26 = vpack.c.bf16 %v125_v25, %v124_v24  ;;  %v438_v30 = vld [vmem:[%s2633_s3 + $0x10] sm:$0xff]  ;;  %v1561_v31 = vpack.c.bf16 %v437_v29, %v436_v28  ;;  %v439_v32 = vld [vmem:[%s2633_s3 + $0x18] sm:$0xff]  ;;  %v440_v34 = vld [vmem:[%s2633_s3 + $0x20] sm:$0xff] }
  0x2f   :  { %v1564_v33 = vpack.c.bf16 %v439_v32, %v438_v30  ;;  %v441_v35 = vld [vmem:[%s2633_s3 + $0x28] sm:$0xff]  ;;  %v442_v37 = vld [vmem:[%s2633_s3 + $0x30] sm:$0xff]  ;;  %v443_v38 = vld [vmem:[%s2633_s3 + $0x38] sm:$0xff] }
  0x30   :  { %1562 = vmatpush3.bf16.msra.mxu1 %v1561_v31  ;;  %v1567_v36 = vpack.c.bf16 %v441_v35, %v440_v34  ;;  %v1570_v39 = vpack.c.bf16 %v443_v38, %v442_v37  ;;  %v444_v40 = vld [vmem:[%s2633_s3 + $0x40] sm:$0xff]  ;;  %v445_v41 = vld [vmem:[%s2633_s3 + $0x48] sm:$0xff]  ;;  %v446_v43 = vld [vmem:[%s2633_s3 + $0x50] sm:$0xff] }
  0x31   :  { %1540 = vmatpush3.bf16.msra.mxu0 %v1539_v4  ;;  %1563 = vmatprep.subr.bf16.mxu1 %v1772_v50  ;;  %v1573_v42 = vpack.c.bf16 %v445_v41, %v444_v40  ;;  %v447_v44 = vld [vmem:[%s2633_s3 + $0x58] sm:$0xff]  ;;  %v448_v46 = vld [vmem:[%s2633_s3 + $0x60] sm:$0xff]  ;;  %v449_v47 = vld [vmem:[%s2633_s3 + $0x68] sm:$0xff] }
  0x32   :  { %1542 = vmatprep.subr.bf16.mxu0 %v1541_v5  ;;  %v1576_v45 = vpack.c.bf16 %v447_v44, %v446_v43  ;;  %v1579_v48 = vpack.c.bf16 %v449_v47, %v448_v46  ;;  %v450_v49 = vld [vmem:[%s2633_s3 + $0x70] sm:$0xff]  ;;  %v451_v51 = vld [vmem:[%s2633_s3 + $0x78] sm:$0xff]  ;;  %v530_v53 = vld [vmem:[%s2635_s5] sm:$0xff] }
  0x33   :  { %v1582_v52 = vpack.c.bf16 %v451_v51, %v450_v49  ;;  %v531_v54 = vld [vmem:[%s2635_s5 + $0x8] sm:$0xff]  ;;  %v1196_v57 = vld [vmem:[%s2632_s2] ss:$0 sm:$0xff]  ;;  %v618_v21 = vld [vmem:[%s2637_s7 + $0x10] sm:$0xff] }
  0x34   :  { %1565 = vmatpush3.bf16.msra.mxu1 %v1564_v33  ;;  %v1585_v55 = vpack.c.bf16 %v531_v54, %v530_v53  ;;  %v616_v13 = vld [vmem:[%s2637_s7] sm:$0xff]  ;;  %v617_v14 = vld [vmem:[%s2637_s7 + $0x8] sm:$0xff]  ;;  %v711_v28 = vld [vmem:[%s2639_s9 + $0x50] sm:$0xff] }
  0x35   :  { %1544 = vmatpush3.bf16.msra.mxu0 %v1543_v10  ;;  %1566 = vmatprep.subr.bf16.mxu1 %v1772_v50  ;;  %v532_v10 = vld [vmem:[%s2635_s5 + $0x10] sm:$0xff]  ;;  %v1591_v15 = vpack.c.bf16 %v617_v14, %v616_v13  ;;  %v702_v24 = vld [vmem:[%s2639_s9 + $0x8] sm:$0xff]  ;;  %v709_v25 = vld [vmem:[%s2639_s9 + $0x40] sm:$0xff] }
  0x36   :  { %1546 = vmatprep.subr.bf16.mxu0 %v1545_v11  ;;  %v533_v11 = vld [vmem:[%s2635_s5 + $0x18] sm:$0xff]  ;;  %v701_v29 = vld [vmem:[%s2639_s9] sm:$0xff]  ;;  %v723_v34 = vld [vmem:[%s2639_s9 + $0xb0] sm:$0xff] }
  0x37   :  { %v1588_v12 = vpack.c.bf16 %v533_v11, %v532_v10  ;;  %v708_v30 = vld [vmem:[%s2639_s9 + $0x38] sm:$0xff]  ;;  %v722_v37 = vld [vmem:[%s2639_s9 + $0xa8] sm:$0xff]  ;;  %v737_v40 = vld [vmem:[%s2639_s9 + $0x120] sm:$0xff] }
  0x38   :  { %1568 = vmatpush3.bf16.msra.mxu1 %v1567_v36  ;;  %v1598_v32 = vpack.c.bf16 %v708_v30, %v701_v29  ;;  %v716_v33 = vld [vmem:[%s2639_s9 + $0x78] sm:$0xff]  ;;  %v715_v36 = vld [vmem:[%s2639_s9 + $0x70] sm:$0xff]  ;;  %v750_v49 = vld [vmem:[%s2639_s9 + $0x188] sm:$0xff] }
  0x39   :  { %1548 = vmatpush3.bf16.msra.mxu0 %v1547_v16  ;;  %1569 = vmatprep.subr.bf16.mxu1 %v1772_v50  ;;  %v1198_v16 = vld [vmem:[%s2634_s4] ss:$0 sm:$0xff]  ;;  %v1600_v35 = vpack.c.bf16 %v723_v34, %v716_v33  ;;  %v1602_v38 = vpack.c.bf16 %v722_v37, %v715_v36  ;;  %v736_v43 = vld [vmem:[%s2639_s9 + $0x118] sm:$0xff]  ;;  %v751_v46 = vld [vmem:[%s2639_s9 + $0x190] sm:$0xff] }
  0x3a   :  { %1550 = vmatprep.subr.bf16.mxu0 %v1549_v17  ;;  %v765_v53 = vld [vmem:[%s2639_s9 + $0x200] sm:$0xff]  ;;  %v718_v11 = vld [vmem:[%s2639_s9 + $0x88] sm:$0xff]  ;;  %v767_v33 = vld [vmem:[%s2639_s9 + $0x210] sm:$0xff] }
  0x3b   :  { %v745_v30 = vld [vmem:[%s2639_s9 + $0x160] sm:$0xff]  ;;  %v759_v36 = vld [vmem:[%s2639_s9 + $0x1d0] sm:$0xff]  ;;  %v766_v37 = vld [vmem:[%s2639_s9 + $0x208] sm:$0xff] }
  0x3c   :  { %1571 = vmatpush3.bf16.msra.mxu1 %v1570_v39  ;;  %v730_v39 = vld [vmem:[%s2639_s9 + $0xe8] sm:$0xff] }
  0x3d   :  { %1552 = vmatpush3.bf16.msra.mxu0 %v1551_v22  ;;  %1572 = vmatprep.subr.bf16.mxu1 %v1772_v50  ;;  %v619_v22 = vld [vmem:[%s2637_s7 + $0x18] sm:$0xff]  ;;  %v1604_v41 = vpack.c.bf16 %v737_v40, %v730_v39  ;;  %v781_v39 = vld [vmem:[%s2639_s9 + $0x280] sm:$0xff]  ;;  %v1646_v40 = vpack.c.bf16 %v766_v37, %v759_v36  ;;  %v754_v37 = vld [vmem:[%s2639_s9 + $0x1a8] sm:$0xff] }
  0x3e   :  { %1554 = vmatprep.subr.bf16.mxu0 %v1553_v23  ;;  %v1594_v23 = vpack.c.bf16 %v619_v22, %v618_v21  ;;  %v739_v21 = vld [vmem:[%s2639_s9 + $0x130] sm:$0xff] }
  0x40   :  { %1574 = vmatpush3.bf16.msra.mxu1 %v1573_v42  ;;  %v729_v42 = vld [vmem:[%s2639_s9 + $0xe0] sm:$0xff] }
  0x41   :  { %1556 = vmatpush3.bf16.msra.mxu0 %v1555_v26  ;;  %1575 = vmatprep.subr.bf16.mxu1 %v1772_v50  ;;  %v704_v26 = vld [vmem:[%s2639_s9 + $0x18] sm:$0xff]  ;;  %v1606_v44 = vpack.c.bf16 %v736_v43, %v729_v42  ;;  %v773_v42 = vld [vmem:[%s2639_s9 + $0x240] sm:$0xff] }
  0x42   :  { %1584 = vmatprep.subr.bf16.mxu0 %v1772_v50  ;;  %v1628_v31 = vpack.c.bf16 %v711_v28, %v704_v26  ;;  %v746_v26 = vld [vmem:[%s2639_s9 + $0x168] sm:$0xff]  ;;  %v780_v43 = vld [vmem:[%s2639_s9 + $0x278] sm:$0xff] }
  0x44   :  { %360 = vmatmul.mubr.f32.vlgmr.msra.gmra.mrb[2].mxu0 %v43_v27  ;;  %1577 = vmatpush3.bf16.msra.mxu1 %v1576_v45  ;;  %v1596_v27 = vpack.c.bf16 %v709_v25, %v702_v24  ;;  %v744_v45 = vld [vmem:[%s2639_s9 + $0x158] sm:$0xff]  ;;  %v731_v24 = vld [vmem:[%s2639_s9 + $0xf0] sm:$0xff]  ;;  %v738_v25 = vld [vmem:[%s2639_s9 + $0x128] sm:$0xff] }
  0x45   :  { %1412 = vmatprep.mubr.msk.f32.mxu0 %vm1773_vm0, %v1774_v60  ;;  %1578 = vmatprep.subr.bf16.mxu1 %v1772_v50  ;;  %v1608_v47 = vpack.c.bf16 %v751_v46, %v744_v45  ;;  %v1638_v28 = vpack.c.bf16 %v738_v25, %v731_v24  ;;  %v795_v45 = vld [vmem:[%s2639_s9 + $0x2f0] sm:$0xff]  ;;  %v1650_v46 = vpack.c.bf16 %v780_v43, %v773_v42  ;;  %v761_v43 = vld [vmem:[%s2639_s9 + $0x1e0] sm:$0xff] }
  0x46   :  { %1586 = vmatpush3.bf16.msra.mxu0 %v1585_v55  ;;  %v757_v55 = vld [vmem:[%s2639_s9 + $0x1c0] sm:$0xff] }
  0x47   :  { %1587 = vmatprep.subr.bf16.mxu0 %v1772_v50 }
  0x48   :  { %1580 = vmatpush3.bf16.msra.mxu1 %v1579_v48  ;;  %v743_v48 = vld [vmem:[%s2639_s9 + $0x150] sm:$0xff] }
  0x49   :  { %1581 = vmatprep.subr.bf16.mxu1 %v1772_v50  ;;  %v1610_v51 = vpack.c.bf16 %v750_v49, %v743_v48  ;;  %v787_v48 = vld [vmem:[%s2639_s9 + $0x2b0] sm:$0xff]  ;;  %v794_v49 = vld [vmem:[%s2639_s9 + $0x2e8] sm:$0xff] }
  0x4a   :  { %1589 = vmatpush3.bf16.msra.mxu0 %v1588_v12  ;;  %v725_v12 = vld [vmem:[%s2639_s9 + $0xc0] sm:$0xff] }
  0x4b   :  { %1597 = vmatprep.subr.bf16.mxu0 %v1596_v27  ;;  %v753_v27 = vld [vmem:[%s2639_s9 + $0x1a0] sm:$0xff] }
  0x4c   :  { %1583 = vmatpush3.bf16.msra.mxu1 %v1582_v52  ;;  %v758_v52 = vld [vmem:[%s2639_s9 + $0x1c8] sm:$0xff]  ;;  %v1640_v29 = vpack.c.bf16 %v753_v27, %v746_v26  ;;  %v733_v26 = vld [vmem:[%s2639_s9 + $0x100] sm:$0xff] }
  0x4d   :  { %1590 = vmatprep.subr.bf16.mxu1 %v1772_v50  ;;  %v1612_v54 = vpack.c.bf16 %v765_v53, %v758_v52  ;;  %v800_v52 = vld [vmem:[%s2639_s9 + $0x318] sm:$0xff]  ;;  %v807_v53 = vld [vmem:[%s2639_s9 + $0x350] sm:$0xff] }
  0xf7   :  { %v1242_v56 = vpop.f32.mrb[0].mxu0 }
  0xf8   :  { %v1243_v58 = vpop.f32.mrb[1].mxu0 }
  0xf9   :  { %v1277_v59 = vpop.f32.mrb[0].mxu1  ;;  %v1244_v61 = vadd.f32 %v1243_v58, %v1242_v56  ;;  %v764_v56 = vld [vmem:[%s2639_s9 + $0x1f8] sm:$0xff] }
  0xfa   :  { %v1278_v62 = vpop.f32.mrb[1].mxu1  ;;  %v772_v58 = vld [vmem:[%s2639_s9 + $0x238] sm:$0xff] }
  0xfb   :  { %v1279_v63 = vadd.f32 %v1278_v62, %v1277_v59  ;;  %v222_v0 = vadd.f32 %v1244_v61, %v1196_v57  ;;  %v1614_v57 = vpack.c.bf16 %v764_v56, %v757_v55  ;;  %v779_v59 = vld [vmem:[%s2639_s9 + $0x270] sm:$0xff]  ;;  %v1624_v55 = vpack.c.bf16 %v807_v53, %v800_v52  ;;  %v809_v56 = vld [vmem:[%s2639_s9 + $0x360] sm:$0xff] }
  0xfc   :  { %v1616_v61 = vpack.c.bf16 %v779_v59, %v772_v58  ;;  %v771_v62 = vld [vmem:[%s2639_s9 + $0x230] sm:$0xff]  ;;  %v806_v58 = vld [vmem:[%s2639_s9 + $0x348] sm:$0xff] }
  0xfd   :  { %v292_v1 = vadd.f32 %v1279_v63, %v222_v0  ;;  %v431_v2 = vpop.f32.mrb[2].mxu1  ;;  %v778_v63 = vld [vmem:[%s2639_s9 + $0x268] sm:$0xff]  ;;  %v775_v53 = vld [vmem:[%s2639_s9 + $0x250] sm:$0xff] }
  0xfe   :  { %v1368_v3 = vpop.f32.mrb[3].mxu1  ;;  %v1618_v0 = vpack.c.bf16 %v778_v63, %v771_v62  ;;  %v801_v62 = vld [vmem:[%s2639_s9 + $0x320] sm:$0xff]  ;;  %v808_v63 = vld [vmem:[%s2639_s9 + $0x358] sm:$0xff] }
 0x117   :  { %v1312_v4 = vpop.f32.mrb[2].mxu0 }
 0x118   :  { %v1313_v5 = vpop.f32.mrb[3].mxu0 }
 0x119   :  { %v1314_v6 = vadd.f32 %v1313_v5, %v1312_v4  ;;  %v785_v4 = vld [vmem:[%s2639_s9 + $0x2a0] sm:$0xff]  ;;  %v792_v5 = vld [vmem:[%s2639_s9 + $0x2d8] sm:$0xff] }
 0x11b   :  { %v362_v7 = vadd.f32 %v1314_v6, %v292_v1  ;;  %v786_v1 = vld [vmem:[%s2639_s9 + $0x2a8] sm:$0xff]  ;;  %v1622_v6 = vpack.c.bf16 %v792_v5, %v785_v4  ;;  %v1201_v4 = vld [vmem:[%s2638_s8] ss:$0 sm:$0xff] }
 0x11c   :  { %v705_v5 = vld [vmem:[%s2639_s9 + $0x20] sm:$0xff] }
 0x11d   :  { %v432_v8 = vadd.f32 %v431_v2, %v362_v7  ;;  %v793_v2 = vld [vmem:[%s2639_s9 + $0x2e0] sm:$0xff] }
 0x11e   :  { %v1620_v3 = vpack.c.bf16 %v793_v2, %v786_v1  ;;  %v1199_v7 = vld [vmem:[%s2636_s6] ss:$0 sm:$0xff]  ;;  %v706_v1 = vld [vmem:[%s2639_s9 + $0x28] sm:$0xff] }
 0x11f   :  { %v435_v9 = vmax.f32 %v432_v8, 0.0  ;;  %v703_v8 = vld [vmem:[%s2639_s9 + $0x10] sm:$0xff]  ;;  %v713_v2 = vld [vmem:[%s2639_s9 + $0x60] sm:$0xff] }
 0x121   :  { %1402 = vmatmul.mubr.f32.vlgmr.msra.gmra.mrb[4].mxu1 %v435_v9  ;;  %v710_v9 = vld [vmem:[%s2639_s9 + $0x48] sm:$0xff] }
 0x122   :  { %1423 = vmatprep.mubr.msk.f32.mxu1 %vm1773_vm0, %v1774_v60  ;;  %1592 = vmatpush3.bf16.msra.mxu1 %v1591_v15  ;;  %v1630_v15 = vpack.c.bf16 %v710_v9, %v703_v8  ;;  %v714_v8 = vld [vmem:[%s2639_s9 + $0x68] sm:$0xff] }
 0x123   :  { %1593 = vmatprep.subr.bf16.mxu1 %v1772_v50 }
 0x126   :  { %1595 = vmatpush3.bf16.msra.mxu1 %v1594_v23 }
 0x127   :  { %1629 = vmatprep.subr.bf16.mxu1 %v1628_v31  ;;  %v752_v31 = vld [vmem:[%s2639_s9 + $0x198] sm:$0xff] }
 0x128   :  { %v1642_v34 = vpack.c.bf16 %v752_v31, %v745_v30  ;;  %v742_v30 = vld [vmem:[%s2639_s9 + $0x148] sm:$0xff]  ;;  %v748_v31 = vld [vmem:[%s2639_s9 + $0x178] sm:$0xff] }
 0x1f4   :  { %v525_v17 = vpop.f32.mrb[4].mxu1 }
 0x1f5   :  { %v526_v18 = vadd.f32 %v1198_v16, %v525_v17  ;;  %v1403_v19 = vpop.f32.mrb[5].mxu1  ;;  %v1632_v17 = vpack.c.bf16 %v725_v12, %v718_v11  ;;  %v727_v11 = vld [vmem:[%s2639_s9 + $0xd0] sm:$0xff] }
 0x1f6   :  { %v724_v19 = vld [vmem:[%s2639_s9 + $0xb8] sm:$0xff] }
 0x1f7   :  { %v529_v20 = vmax.f32 %v526_v18, 0.0  ;;  %v717_v18 = vld [vmem:[%s2639_s9 + $0x80] sm:$0xff] }
 0x1f8   :  { %v1634_v22 = vpack.c.bf16 %v724_v19, %v717_v18  ;;  %v726_v19 = vld [vmem:[%s2639_s9 + $0xc8] sm:$0xff] }
 0x1f9   :  { %1413 = vmatmul.mubr.msk.f32.vlgmr.msra.gmra.mrb[4].mxu0 %vm541_vm2, %v529_v20  ;;  %v732_v20 = vld [vmem:[%s2639_s9 + $0xf8] sm:$0xff] }
 0x1fa   :  { %914 = vmatprep.mubr.f32.mxu0 %v1774_v60  ;;  %1599 = vmatpush1.bf16.msra.mxu0 %v1598_v32  ;;  %v1636_v23 = vpack.c.bf16 %v739_v21, %v732_v20  ;;  %v760_v32 = vld [vmem:[%s2639_s9 + $0x1d8] sm:$0xff]  ;;  %v721_v20 = vld [vmem:[%s2639_s9 + $0xa0] sm:$0xff] }
 0x1fb   :  { %1601 = vmatprep.subr.bf16.mxu0 %v1600_v35  ;;  %v1644_v35 = vpack.c.bf16 %v767_v33, %v760_v32  ;;  %v728_v21 = vld [vmem:[%s2639_s9 + $0xd8] sm:$0xff]  ;;  %v755_v32 = vld [vmem:[%s2639_s9 + $0x1b0] sm:$0xff] }
 0x1fc   :  { %v1696_v25 = vpack.c.bf16 %v728_v21, %v721_v20  ;;  %v1672_v36 = vpack.c.bf16 %v755_v32, %v748_v31  ;;  %v813_v20 = vld [vmem:[%s2640_s10] sm:$0x7f] }
 0x1fe   :  { %1603 = vmatpush1.bf16.msra.mxu0 %v1602_v38  ;;  %v774_v38 = vld [vmem:[%s2639_s9 + $0x248] sm:$0xff] }
 0x1ff   :  { %1605 = vmatprep.subr.bf16.mxu0 %v1604_v41  ;;  %v1648_v41 = vpack.c.bf16 %v781_v39, %v774_v38  ;;  %v756_v38 = vld [vmem:[%s2639_s9 + $0x1b8] sm:$0xff]  ;;  %v762_v39 = vld [vmem:[%s2639_s9 + $0x1e8] sm:$0xff] }
 0x202   :  { %1607 = vmatpush1.bf16.msra.mxu0 %v1606_v44  ;;  %v788_v44 = vld [vmem:[%s2639_s9 + $0x2b8] sm:$0xff] }
 0x203   :  { %1609 = vmatprep.subr.bf16.mxu0 %v1608_v47  ;;  %v1652_v47 = vpack.c.bf16 %v795_v45, %v788_v44  ;;  %v768_v45 = vld [vmem:[%s2639_s9 + $0x218] sm:$0xff] }
 0x206   :  { %1611 = vmatpush1.bf16.msra.mxu0 %v1610_v51  ;;  %v1654_v51 = vpack.c.bf16 %v794_v49, %v787_v48  ;;  %v776_v48 = vld [vmem:[%s2639_s9 + $0x258] sm:$0xff]  ;;  %v783_v49 = vld [vmem:[%s2639_s9 + $0x290] sm:$0xff] }
 0x207   :  { %1613 = vmatprep.subr.bf16.mxu0 %v1612_v54  ;;  %v802_v54 = vld [vmem:[%s2639_s9 + $0x328] sm:$0xff] }
 0x208   :  { %v1656_v59 = vpack.c.bf16 %v809_v56, %v802_v54  ;;  %v1680_v54 = vpack.c.bf16 %v783_v49, %v776_v48  ;;  %v777_v56 = vld [vmem:[%s2639_s9 + $0x260] sm:$0xff] }
 0x20a   :  { %1615 = vmatpush1.bf16.msra.mxu0 %v1614_v57  ;;  %v799_v57 = vld [vmem:[%s2639_s9 + $0x310] sm:$0xff] }
 0x20b   :  { %1617 = vmatprep.subr.bf16.mxu0 %v1616_v61  ;;  %v1626_v61 = vpack.c.bf16 %v806_v58, %v799_v57  ;;  %v784_v57 = vld [vmem:[%s2639_s9 + $0x298] sm:$0xff]  ;;  %v790_v58 = vld [vmem:[%s2639_s9 + $0x2c8] sm:$0xff] }
 0x20e   :  { %1619 = vmatpush1.bf16.msra.mxu0 %v1618_v0  ;;  %v1658_v0 = vpack.c.bf16 %v808_v63, %v801_v62  ;;  %v1708_v62 = vpack.c.bf16 %v784_v57, %v777_v56  ;;  %v789_v63 = vld [vmem:[%s2639_s9 + $0x2c0] sm:$0xff] }
 0x20f   :  { %1621 = vmatprep.subr.bf16.mxu0 %v1620_v3  ;;  %v1660_v3 = vpack.c.bf16 %v713_v2, %v706_v1  ;;  %v796_v1 = vld [vmem:[%s2639_s9 + $0x2f8] sm:$0xff]  ;;  %v791_v2 = vld [vmem:[%s2639_s9 + $0x2d0] sm:$0xff] }
 0x212   :  { %1623 = vmatpush1.bf16.msra.mxu0 %v1622_v6  ;;  %v712_v6 = vld [vmem:[%s2639_s9 + $0x58] sm:$0xff] }
 0x213   :  { %1625 = vmatprep.subr.bf16.mxu0 %v1624_v55  ;;  %v782_v55 = vld [vmem:[%s2639_s9 + $0x288] sm:$0xff] }
 0x216   :  { %1627 = vmatpush1.bf16.msra.mxu0 %v1626_v61  ;;  %v1682_v61 = vpack.c.bf16 %v782_v55, %v775_v53 }
 0x217   :  { %1661 = vmatprep.subr.bf16.mxu0 %v1660_v3  ;;  %v798_v3 = vld [vmem:[%s2639_s9 + $0x308] sm:$0xff] }
 0x2cc   :  { %v611_v10 = vpop.f32.mrb[4].mxu0 }
 0x2cd   :  { %v612_v13 = vadd.f32 %v1199_v7, %v611_v10  ;;  %v1414_v14 = vpop.f32.mrb[5].mxu0  ;;  %v707_v7 = vld [vmem:[%s2639_s9 + $0x30] sm:$0xff]  ;;  %v720_v10 = vld [vmem:[%s2639_s9 + $0x98] sm:$0xff] }
 0x2ce   :  { %v1662_v14 = vpack.c.bf16 %v712_v6, %v705_v5  ;;  %v1664_v18 = vpack.c.bf16 %v727_v11, %v720_v10  ;;  %v811_v5 = vld [vmem:[%s2639_s9 + $0x370] sm:$0xff]  ;;  %v1686_v6 = vpack.c.bf16 %v796_v1, %v789_v63  ;;  %v810_v10 = vld [vmem:[%s2639_s9 + $0x368] sm:$0xff]  ;;  %v805_v11 = vld [vmem:[%s2639_s9 + $0x340] sm:$0xff] }
 0x2cf   :  { %v615_v16 = vmax.f32 %v612_v13, 0.0 }
 0x2d1   :  { %1424 = vmatmul.mubr.msk.f32.vlgmr.msra.gmra.mrb[6].mxu1 %vm541_vm2, %v615_v16  ;;  %v719_v16 = vld [vmem:[%s2639_s9 + $0x90] sm:$0xff] }
 0x2d2   :  { %1631 = vmatpush1.bf16.msra.mxu1 %v1630_v15  ;;  %985 = vmatprep.mubr.f32.mxu1 %v1774_v60  ;;  %v1693_v15 = vpack.c.bf16 %v714_v8, %v707_v7  ;;  %v1666_v24 = vpack.c.bf16 %v726_v19, %v719_v16  ;;  %v1711_v7 = vpack.c.bf16 %v798_v3, %v791_v2  ;;  %v803_v8 = vld [vmem:[%s2639_s9 + $0x330] sm:$0xff] }
 0x2d3   :  { %1633 = vmatprep.subr.bf16.mxu1 %v1632_v17 }
 0x2d6   :  { %1635 = vmatpush1.bf16.msra.mxu1 %v1634_v22  ;;  %v734_v22 = vld [vmem:[%s2639_s9 + $0x108] sm:$0xff] }
 0x2d7   :  { %1637 = vmatprep.subr.bf16.mxu1 %v1636_v23  ;;  %v741_v23 = vld [vmem:[%s2639_s9 + $0x140] sm:$0xff] }
 0x2d8   :  { %v1668_v27 = vpack.c.bf16 %v741_v23, %v734_v22 }
 0x2da   :  { %1639 = vmatpush1.bf16.msra.mxu1 %v1638_v28  ;;  %v740_v28 = vld [vmem:[%s2639_s9 + $0x138] sm:$0xff] }
 0x2db   :  { %1641 = vmatprep.subr.bf16.mxu1 %v1640_v29  ;;  %v735_v29 = vld [vmem:[%s2639_s9 + $0x110] sm:$0xff]  ;;  %v1670_v33 = vpack.c.bf16 %v740_v28, %v733_v26 }
 0x2de   :  { %1643 = vmatpush1.bf16.msra.mxu1 %v1642_v34  ;;  %v1699_v34 = vpack.c.bf16 %v742_v30, %v735_v29 }
 0x2df   :  { %1645 = vmatprep.subr.bf16.mxu1 %v1644_v35  ;;  %v747_v35 = vld [vmem:[%s2639_s9 + $0x170] sm:$0xff] }
 0x2e2   :  { %1647 = vmatpush1.bf16.msra.mxu1 %v1646_v40  ;;  %v769_v40 = vld [vmem:[%s2639_s9 + $0x220] sm:$0xff] }
 0x2e3   :  { %1649 = vmatprep.subr.bf16.mxu1 %v1648_v41  ;;  %v1674_v41 = vpack.c.bf16 %v754_v37, %v747_v35  ;;  %v1676_v44 = vpack.c.bf16 %v769_v40, %v762_v39 }
 0x2e6   :  { %1651 = vmatpush1.bf16.msra.mxu1 %v1650_v46  ;;  %v763_v46 = vld [vmem:[%s2639_s9 + $0x1f0] sm:$0xff] }
 0x2e7   :  { %1653 = vmatprep.subr.bf16.mxu1 %v1652_v47  ;;  %v770_v47 = vld [vmem:[%s2639_s9 + $0x228] sm:$0xff] }
 0x2e8   :  { %v1705_v52 = vpack.c.bf16 %v770_v47, %v763_v46 }
 0x2ea   :  { %1655 = vmatpush1.bf16.msra.mxu1 %v1654_v51  ;;  %v1678_v51 = vpack.c.bf16 %v768_v45, %v761_v43 }
 0x2eb   :  { %1657 = vmatprep.subr.bf16.mxu1 %v1656_v59  ;;  %v797_v59 = vld [vmem:[%s2639_s9 + $0x300] sm:$0xff] }
 0x2ee   :  { %1659 = vmatpush1.bf16.msra.mxu1 %v1658_v0  ;;  %v1684_v0 = vpack.c.bf16 %v797_v59, %v790_v58 }
 0x2ef   :  { %1692 = vmatprep.subr.bf16.mxu1 %v1772_v50 }
 0x3a4   :  { %v696_v9 = vpop.f32.mrb[6].mxu1 }
 0x3a5   :  { %v697_v12 = vadd.f32 %v1201_v4, %v696_v9  ;;  %v1425_v13 = vpop.f32.mrb[7].mxu1  ;;  %v804_v4 = vld [vmem:[%s2639_s9 + $0x338] sm:$0xff] }
 0x3a6   :  { %v1688_v9 = vpack.c.bf16 %v811_v5, %v804_v4  ;;  %v1690_v13 = vpack.c.bf16 %v810_v10, %v803_v8 }
 0x3a7   :  { %v2481_v17 = vmax.f32 %v697_v12, 0.0  ;;  %v812_v12 = vld [vmem:[%s2639_s9 + $0x378] sm:$0xff] }
 0x3a9   :  { %915 = vmatmul.mubr.f32.vlgmr.msra.gmra.mrb[6].mxu0 %v2481_v17  ;;  %986 = vmatmul.mubr.f32.vlgmr.msra.gmra.mrb[8].mxu1 %v2481_v17 }
 0x3aa   :  { %1663 = vmatpush1.bf16.msra.mxu0 %v1662_v14  ;;  %1694 = vmatpush3.bf16.msra.mxu1 %v1693_v15  ;;  %v1714_v14 = vpack.c.bf16 %v812_v12, %v805_v11  ;;  %v815_v15 = vlaneseq }
 0x3ab   :  { %1665 = vmatprep.subr.bf16.mxu0 %v1664_v18  ;;  %1695 = vmatprep.subr.bf16.mxu1 %v1772_v50 }
 0x3ac   :  { %1056 = vmatprep.mubr.f32.mxu0 %v1774_v60  ;;  %1458 = vmatprep.mubr.msk.f32.mxu1 %vm1773_vm0, %v1774_v60  ;;  %v749_v60 = vld [vmem:[%s2639_s9 + $0x180] sm:$0xff]  ;;  %v816_v16 = vshrl.u32 %v815_v15, 7  ;;  %s1775_s9 = smov [#allocation2]  }
 0x3ad   :  { %v1702_v42 = vpack.c.bf16 %v756_v38, %v749_v60  ;;  %s1188_s10 = sshll.u32 %s1775_s9, 4  ;;  %s1189_s10 = int_to_ptr.vmem [resolvable:$true] %s1188_s10 }
 0x3ae   :  { %1667 = vmatpush1.bf16.msra.mxu0 %v1666_v24  ;;  %1697 = vmatpush3.bf16.msra.mxu1 %v1696_v25  ;;  %v817_v18 = vsub.s32 0, %v816_v16  ;;  %v825_v19 = vsub.s32 2, %v816_v16  ;;  %v821_v21 = vsub.s32 1, %v816_v16  ;;  %v829_v22 = vsub.s32 3, %v816_v16  ;;  %s1748_s8 = scalar_lea.vmem %s1189_s10, 896  ;;  %p1753_p1 = scmp.lt.s32.totalorder %s1189_s10, %s1189_s10 }
 0x3af   :  { %1669 = vmatprep.subr.bf16.mxu0 %v1668_v27  ;;  %1698 = vmatprep.subr.bf16.mxu1 %v1772_v50  ;;  %v841_v45 = vsub.s32 6, %v816_v16  ;;  %v837_v46 = vsub.s32 5, %v816_v16  ;;  %p1749_p0 = scmp.ne.s32.totalorder %s1189_s10, %s1748_s8  ;;  %p1754_p2 = scmp.lt.s32.totalorder %s1748_s8, %s1748_s8 }
 0x3b0   :  { %v818_v23 = vrot.slane %v813_v20, %v817_v18  ;;  %v826_v24 = vrot.slane %v813_v20, %v825_v19  ;;  %v822_v25 = vrot.slane %v813_v20, %v821_v21 }
 0x3b1   :  { %v838_v53 = vrot.slane %v813_v20, %v837_v46  ;;  %p1755_p3 = por %p1754_p2, %p1753_p1 }
 0x3b2   :  { %1671 = vmatpush1.bf16.msra.mxu0 %v1670_v33  ;;  %1700 = vmatpush3.bf16.msra.mxu1 %v1699_v34 }
 0x3b3   :  { %1673 = vmatprep.subr.bf16.mxu0 %v1672_v36  ;;  %1701 = vmatprep.subr.bf16.mxu1 %v1772_v50  ;;  %p1756_p4 = pnand %p1755_p3, %p1749_p0 }
 0x3b6   :  { %1675 = vmatpush1.bf16.msra.mxu0 %v1674_v41  ;;  %1703 = vmatpush3.bf16.msra.mxu1 %v1702_v42 }
 0x3b7   :  { %1677 = vmatprep.subr.bf16.mxu0 %v1676_v44  ;;  %1704 = vmatprep.subr.bf16.mxu1 %v1772_v50  ;;  %v833_v44 = vsub.s32 4, %v816_v16 }
 0x3b9   :  { %v834_v49 = vrot.slane %v813_v20, %v833_v44 }
 0x3ba   :  { %1679 = vmatpush1.bf16.msra.mxu0 %v1678_v51  ;;  %1706 = vmatpush3.bf16.msra.mxu1 %v1705_v52  ;;  %v842_v51 = vrot.slane %v813_v20, %v841_v45 }
 0x3bb   :  { %1681 = vmatprep.subr.bf16.mxu0 %v1680_v54  ;;  %1707 = vmatprep.subr.bf16.mxu1 %v1772_v50 }
 0x3be   :  { %1683 = vmatpush1.bf16.msra.mxu0 %v1682_v61  ;;  %1709 = vmatpush3.bf16.msra.mxu1 %v1708_v62 }
 0x3bf   :  { %1685 = vmatprep.subr.bf16.mxu0 %v1684_v0  ;;  %1710 = vmatprep.subr.bf16.mxu1 %v1772_v50 }
 0x3c2   :  { %1687 = vmatpush1.bf16.msra.mxu0 %v1686_v6  ;;  %1712 = vmatpush3.bf16.msra.mxu1 %v1711_v7 }
 0x3c3   :  { %1689 = vmatprep.subr.bf16.mxu0 %v1688_v9  ;;  %1713 = vmatprep.subr.bf16.mxu1 %v1772_v50  ;;  %v830_v50 = vrot.slane %v813_v20, %v829_v22 }
 0x3c6   :  { %1691 = vmatpush1.bf16.msra.mxu0 %v1690_v13  ;;  %1715 = vmatpush3.bf16.msra.mxu1 %v1714_v14 }
 0x3c9   :  { %1057 = vmatmul.mubr.f32.vlgmr.msra.gmra.mrb[8].mxu0 %v2481_v17  ;;  %1459 = vmatmul.mubr.f32.vlgmr.msra.gmra.mrb[10].mxu1 %v2481_v17 }
 0x47c   :  { %v916_v26 = vpop.f32.mrb[6].mxu0  ;;  %v987_v27 = vpop.f32.mrb[8].mxu1 }
 0x47d   :  { %v917_v28 = vadd.f32 %v916_v26, %v818_v23  ;;  %v988_v29 = vadd.f32 %v987_v27, %v826_v24  ;;  %v918_v30 = vpop.f32.mrb[7].mxu0  ;;  %v989_v17 = vpop.f32.mrb[9].mxu1 }
 0x47e   :  { %v919_v31 = vadd.f32 %v918_v30, %v822_v25  ;;  %v990_v32 = vadd.f32 %v989_v17, %v830_v50 }
 0x47f   :  { %v1203_v33 = vmul.f32 -1.442695, %v917_v28  ;;  %v1205_v34 = vmul.f32 -1.442695, %v988_v29 }
 0x480   :  { %v1204_v35 = vmul.f32 -1.442695, %v919_v31  ;;  %v1206_v36 = vmul.f32 -1.442695, %v990_v32 }
 0x481   :  { %1720 = vpow2.f32 %v1203_v33 }
 0x482   :  { %1722 = vpow2.f32 %v1205_v34 }
 0x483   :  { %1724 = vpow2.f32 %v1204_v35 }
 0x484   :  { %1726 = vpow2.f32 %v1206_v36 }
 0x48b   :  { %v1721_v37 = vpop.eup %1720 }
 0x48c   :  { %v1723_v60 = vpop.eup %1722  ;;  %v1154_v38 = vadd.f32 1.0, %v1721_v37 }
 0x48d   :  { %v1725_v39 = vpop.eup %1724  ;;  %v1156_v40 = vadd.f32 1.0, %v1723_v60 }
 0x48e   :  { %v1727_v41 = vpop.eup %1726  ;;  %1728 = vrcp.f32 %v1154_v38  ;;  %v1155_v42 = vadd.f32 1.0, %v1725_v39 }
 0x48f   :  { %1730 = vrcp.f32 %v1156_v40  ;;  %v1157_v43 = vadd.f32 1.0, %v1727_v41 }
 0x490   :  { %1732 = vrcp.f32 %v1155_v42 }
 0x491   :  { %1734 = vrcp.f32 %v1157_v43 }
 0x498   :  { %v1729_v47 = vpop.eup %1728 }
 0x499   :  { %v1731_v48 = vpop.eup %1730  ;;  %1175 = vst [vmem:[#allocation2] sm:$0xff] %v1729_v47 }
 0x49a   :  { %v1733_v52 = vpop.eup %1732  ;;  %1177 = vst [vmem:[#allocation2 + $0x10] sm:$0xff] %v1731_v48 }
 0x49b   :  { %v1735_v54 = vpop.eup %1734  ;;  %1176 = vst [vmem:[#allocation2 + $0x8] sm:$0xff] %v1733_v52 }
 0x49c   :  { %1178 = vst [vmem:[#allocation2 + $0x18] sm:$0xff] %v1735_v54  ;;  %v1058_v55 = vpop.f32.mrb[8].mxu0  ;;  %v1129_v56 = vpop.f32.mrb[10].mxu1 }
 0x49d   :  { %v1059_v57 = vadd.f32 %v1058_v55, %v834_v49  ;;  %v1130_v58 = vadd.f32 %v1129_v56, %v842_v51  ;;  %v1060_v59 = vpop.f32.mrb[9].mxu0  ;;  %v1460_v61 = vpop.f32.mrb[11].mxu1 }
 0x49e   :  { %v1061_v62 = vadd.f32 %v1060_v59, %v838_v53 }
 0x49f   :  { %v1207_v63 = vmul.f32 -1.442695, %v1059_v57  ;;  %v1209_v0 = vmul.f32 -1.442695, %v1130_v58 }
 0x4a0   :  { %v1208_v1 = vmul.f32 -1.442695, %v1061_v62 }
 0x4a1   :  { %1736 = vpow2.f32 %v1207_v63 }
 0x4a2   :  { %1738 = vpow2.f32 %v1209_v0 }
 0x4a3   :  { %1740 = vpow2.f32 %v1208_v1 }
 0x4ab   :  { %v1737_v2 = vpop.eup %1736 }
 0x4ac   :  { %v1739_v3 = vpop.eup %1738  ;;  %v1158_v4 = vadd.f32 1.0, %v1737_v2 }
 0x4ad   :  { %v1741_v5 = vpop.eup %1740  ;;  %v1160_v6 = vadd.f32 1.0, %v1739_v3 }
 0x4ae   :  { %1742 = vrcp.f32 %v1158_v4  ;;  %v1159_v7 = vadd.f32 1.0, %v1741_v5 }
 0x4af   :  { %1744 = vrcp.f32 %v1160_v6 }
 0x4b0   :  { %1746 = vrcp.f32 %v1159_v7 }
 0x4b8   :  { %v1743_v8 = vpop.eup %1742 }
 0x4b9   :  { %v1745_v9 = vpop.eup %1744  ;;  %1179 = vst [vmem:[#allocation2 + $0x20] sm:$0xff] %v1743_v8 }
 0x4ba   :  { %v1747_v10 = vpop.eup %1746  ;;  %1181 = vst.msk [vmem:[#allocation2 + $0x30] sm:$0xff] %vm151_vm1, %v1745_v9 }
 0x4bb   :  { %1180 = vst [vmem:[#allocation2 + $0x28] sm:$0xff] %v1747_v10 }
 0x4bc   :  { %1759 = shalt.err (!%p1756_p4)
}
 0x4bd   :  { %s1760_s15 = scalar_lea.hbm %s2641_s11, 896 }
 0x4be   :  { %p1761_p5 = scmp.ne.s32.totalorder %s2641_s11, %s1760_s15  ;;  %p1764_p6 = scmp.lt.u32.totalorder %s1760_s15, %s2641_s11 }
 0x4c0   :  { %p1766_p7 = pnand %p1764_p6, %p1761_p5 }
 0x4c2   :  { %1769 = shalt.err (!%p1766_p7)
}
 0x4c3   :  { %1191 = dma.vmem_to_hbm [thread:$0]  %s1189_s10, 896, %s2641_s11, [#allocation3]  }
 0x4c4   :  { %1770 = dma.done.wait [#allocation3], 896  }
 0x4c5   :  { %1771 = vsyncadd [#allocation3], 4294966400 }
 0x4c6   :  { %1195 = vsyncpa [#allocation3], 1 }

</bundles_post_ra>
